<compile_context>
chip_gen: v7x
topology: tpu7x:2x2x1
jax: 0.10.0
libtpu: 0.0.40
codegen_flags: <defaults>
</compile_context>

<pallas_src>
import math

import jax
import jax.numpy as jnp
from jax.experimental import pallas as pl
from jax.experimental.pallas import tpu as pltpu

EPS = 1e-5
_LANE = 128
_MAX_TILE_P = 8192             # lane-axis tile cap; the VMEM budget bounds it further
_ACT_DTYPE = jnp.bfloat16      # layer-boundary activation storage dtype


def _round_up(x, m):
    return ((x + m - 1) // m) * m


def _vmem_budget_and_limit():
    """Generation-aware VMEM sizing (v7x: 64 MiB physical, v5e/v6e: 128 MiB)."""
    cap = 64 * 1024 * 1024
    try:
        info = pltpu.get_tpu_info()
        cap = int(getattr(info, "vmem_capacity_bytes", cap) or cap)
    except Exception:
        pass
    limit = min(int(cap * 0.6), 96 * 1024 * 1024)   # ~38 MiB on v7x, ~76 MiB on v5e/v6e
    return limit // 2, limit


def _choose_tile_p(P, N, cins, couts, vmem_budget):
    """Largest multiple of 128 (<= _MAX_TILE_P) whose double-buffered blocks fit the
    VMEM budget; shrunk only if needed so v7x's two TensorCores both get a step."""
    t = min(_MAX_TILE_P, _round_up(P, _LANE))

    def blk_bytes(tt):
        # double-buffered bf16 activation in/out blocks + (double-buffered) bf16
        # weight + f32 scale/shift rows.
        # TODO(synk): single-buffer the constant-index weight/scale/shift blocks
        # (pipeline_mode=pl.Buffered(1)) and stop charging 2x for them here.
        return max(2 * 2 * tt * (ci + co) + 2 * 2 * ci * co + 2 * 4 * 2 * ci
                   for ci, co in zip(cins, couts))

    while t > _LANE and blk_bytes(t) > vmem_budget:
        t -= _LANE

    # v7x has 2 TensorCores per chip: guarantee >= 2 parallel grid steps if possible.
    if N * (_round_up(P, t) // t) < 2:
        half = _round_up(_round_up(P, _LANE) // 2, _LANE)
        if half >= _LANE and _round_up(P, half) // half >= 2:
            t = half
    return t


# ---------------------------------------------------------------------------
# Kernels
# ---------------------------------------------------------------------------

def _make_conv_kernel(fuse_pre, need_mask, p_in_last_tile):
    """1x1 conv (W @ x) on the MXU (bf16 operands, f32 accumulation) plus per-tile
    partial [sum, sum_sq] statistics of the f32 conv output.

    If fuse_pre, the previous layer's folded BatchNorm affine + ReLU is applied
    in-register to the bf16-stored input tile before the matmul (no HBM round trip).
    Pad columns only exist in the last P tile, so the mask is gated with pl.when.
    """

    def _compute(x_act, w_ref, y_ref, stats_ref):
        y = jnp.dot(w_ref[...], x_act, preferred_element_type=jnp.float32)  # (Cout, tile_p) f32
        s1 = jnp.sum(y, axis=1, keepdims=True)        # (Cout, 1)
        s2 = jnp.sum(y * y, axis=1, keepdims=True)    # (Cout, 1)
        # TODO(synk): a (2, Cout) lane-major stats block would make this store
        # lane-dense for Cout >= 128; kept (Cout, 2) here for proven lowering.
        stats_ref[...] = jnp.concatenate([s1, s2], axis=1)
        y_ref[...] = y.astype(y_ref.dtype)            # bf16 layer-boundary storage

    if not fuse_pre:
        def kernel(x_ref, w_ref, y_ref, stats_ref):
            _compute(x_ref[...], w_ref, y_ref, stats_ref)
        return kernel

    def _preact(x_ref, scale_ref, shift_ref):
        x = x_ref[...].astype(jnp.float32)
        return jnp.maximum(x * scale_ref[...] + shift_ref[...], 0.0)

    if not need_mask:
        def kernel(x_ref, w_ref, scale_ref, shift_ref, y_ref, stats_ref):
            x = _preact(x_ref, scale_ref, shift_ref).astype(_ACT_DTYPE)
            _compute(x, w_ref, y_ref, stats_ref)
        return kernel

    def kernel(x_ref, w_ref, scale_ref, shift_ref, y_ref, stats_ref):
        is_last = pl.program_id(1) == pl.num_programs(1) - 1

        @pl.when(jnp.logical_not(is_last))
        def _():
            x = _preact(x_ref, scale_ref, shift_ref).astype(_ACT_DTYPE)
            _compute(x, w_ref, y_ref, stats_ref)

        @pl.when(is_last)
        def _():
            x = _preact(x_ref, scale_ref, shift_ref)
            col = jax.lax.broadcasted_iota(jnp.int32, x.shape, 1)
            x = jnp.where(col < p_in_last_tile, x, 0.0)   # keep pad cols out of stats
            _compute(x.astype(_ACT_DTYPE), w_ref, y_ref, stats_ref)

    return kernel


def _bn_relu_kernel(y_ref, scale_ref, shift_ref, o_ref):
    """Folded BatchNorm affine + ReLU for the final layer (bf16 in, f32 out)."""
    y = y_ref[...].astype(jnp.float32)
    o_ref[...] = jnp.maximum(y * scale_ref[...] + shift_ref[...], 0.0)


# ---------------------------------------------------------------------------
# Per-layer pallas_call wrappers
# ---------------------------------------------------------------------------

def _conv_layer(x3, wT, scale, shift, tile_p, p_true, vmem_limit):
    """x3: (N, Cin, P_pad) bf16 -> y: (N, Cout, P_pad) bf16, stats: (N, T, Cout, 2) f32."""
    N, cin, P_pad = x3.shape
    cout = wT.shape[0]
    T = P_pad // tile_p
    fuse_pre = scale is not None
    need_mask = fuse_pre and (P_pad != p_true)
    p_in_last_tile = p_true - (T - 1) * tile_p
    kernel = _make_conv_kernel(fuse_pre, need_mask, p_in_last_tile)

    in_specs = [
        pl.BlockSpec((None, cin, tile_p), lambda n, i: (n, 0, i)),
        pl.BlockSpec((cout, cin), lambda n, i: (0, 0)),
    ]
    args = [x3, wT]
    if fuse_pre:
        in_specs.append(pl.BlockSpec((cin, 1), lambda n, i: (0, 0)))
        in_specs.append(pl.BlockSpec((cin, 1), lambda n, i: (0, 0)))
        args.append(scale.reshape(cin, 1))
        args.append(shift.reshape(cin, 1))

    y, stats = pl.pallas_call(
        kernel,
        out_shape=(
            jax.ShapeDtypeStruct((N, cout, P_pad), _ACT_DTYPE),
            jax.ShapeDtypeStruct((N, T, cout, 2), jnp.float32),
        ),
        grid_spec=pltpu.PrefetchScalarGridSpec(
            num_scalar_prefetch=0,
            grid=(N, T),
            in_specs=in_specs,
            out_specs=(
                pl.BlockSpec((None, cout, tile_p), lambda n, i: (n, 0, i)),
                pl.BlockSpec((None, None, cout, 2), lambda n, i: (n, i, 0, 0)),
            ),
        ),
        compiler_params=pltpu.CompilerParams(
            dimension_semantics=("parallel", "parallel"),
            vmem_limit_bytes=vmem_limit,
        ),
    )(*args)
    return y, stats


def _bn_relu(y3, scale, shift, tile_p, vmem_limit):
    N, cout, P_pad = y3.shape
    T = P_pad // tile_p
    return pl.pallas_call(
        _bn_relu_kernel,
        out_shape=jax.ShapeDtypeStruct((N, cout, P_pad), jnp.float32),
        grid_spec=pltpu.PrefetchScalarGridSpec(
            num_scalar_prefetch=0,
            grid=(N, T),
            in_specs=[
                pl.BlockSpec((None, cout, tile_p), lambda n, i: (n, 0, i)),
                pl.BlockSpec((cout, 1), lambda n, i: (0, 0)),
                pl.BlockSpec((cout, 1), lambda n, i: (0, 0)),
            ],
            out_specs=pl.BlockSpec((None, cout, tile_p), lambda n, i: (n, 0, i)),
        ),
        compiler_params=pltpu.CompilerParams(
            dimension_semantics=("parallel", "parallel"),
            vmem_limit_bytes=vmem_limit,
        ),
    )(y3, scale.reshape(cout, 1), shift.reshape(cout, 1))


def _finalize_bn(stats, count, gamma, beta):
    """Reduce per-tile partial stats and fold training-mode BN into scale/shift."""
    s = jnp.sum(stats, axis=(0, 1))                          # (Cout, 2)
    mean = s[:, 0] / count
    var = jnp.maximum(s[:, 1] / count - mean * mean, 0.0)    # biased variance
    scale = gamma * jax.lax.rsqrt(var + EPS)
    shift = beta - mean * scale
    return scale, shift


# ---------------------------------------------------------------------------
# Forward (jitted) and module wrapper
# ---------------------------------------------------------------------------

def _forward_impl(x, params):
    # x: (N, C, L) for dim=1 or (N, C, H, W) for dim=2 (PyTorch channel-first)
    N, C = x.shape[0], x.shape[1]
    spatial = tuple(x.shape[2:])
    P = int(math.prod(spatial))
    h = x.reshape(N, C, P).astype(_ACT_DTYPE)          # free reshape, no transpose

    couts = [wT.shape[0] for (wT, _, _, _) in params]
    cins = [C] + couts[:-1]
    budget, limit = _vmem_budget_and_limit()
    tile_p = _choose_tile_p(P, N, cins, couts, budget)
    P_pad = _round_up(P, tile_p)
    if P_pad != P:
        h = jnp.pad(h, ((0, 0), (0, 0), (0, P_pad - P)))   # zero pad -> zero conv out

    count = N * P                                       # true element count for stats
    scale = shift = None
    for (wT, _b, gamma, beta) in params:
        # Conv bias dropped: per-channel bias followed by training-mode BN is a no-op.
        wq = wT.astype(_ACT_DTYPE)                      # bf16 MXU operand (tiny cast)
        h, stats = _conv_layer(h, wq, scale, shift, tile_p, P, limit)
        scale, shift = _finalize_bn(stats, count, gamma, beta)

    out = _bn_relu(h, scale, shift, tile_p, limit)      # final layer's BN + ReLU (f32)
    out = out[:, :, :P]
    return out.reshape((N, couts[-1]) + spatial)


_forward_jit = jax.jit(_forward_impl)


class SharedMLPPallas:
    """JAX/Pallas equivalent of pvcnn SharedMLP (forward pass, training-mode BN)."""

    def __init__(self, in_channels, out_channels, dim=1, key=None):
        if dim not in (1, 2):
            raise ValueError
        self.dim = dim
        if not isinstance(out_channels, (list, tuple)):
            out_channels = [out_channels]
        if key is None:
            key = jax.random.PRNGKey(0)
        params = []
        ic = in_channels
        for oc in out_channels:
            key, kw, kb = jax.random.split(key, 3)
            bound = 1.0 / (ic ** 0.5)                       # matches nn.Conv default scale
            wT = jax.random.uniform(kw, (oc, ic), jnp.float32, -bound, bound)   # (Cout, Cin)
            # Conv bias: kept as a parameter for parity, NOT used by the kernels
            # (bias followed by training-mode BN is mathematically a no-op).
            b = jax.random.uniform(kb, (oc,), jnp.float32, -bound, bound)
            gamma = jnp.ones((oc,), jnp.float32)            # BatchNorm default init
            beta = jnp.zeros((oc,), jnp.float32)
            params.append((wT, b, gamma, beta))
            ic = oc
        self.params = tuple(params)

    def __call__(self, inputs):
        if isinstance(inputs, (list, tuple)):
            return (_forward_jit(inputs[0], self.params), *inputs[1:])
        return _forward_jit(inputs, self.params)


# ---------------------------------------------------------------------------
# Pure-JAX reference mirroring the kernel numerics (bf16 MXU operands, bf16
# layer-boundary storage, f32 statistics / BN math).  Conv bias omitted: it is a
# mathematical no-op under training-mode BatchNorm.
# ---------------------------------------------------------------------------

def _reference_forward(mlp, x):
    N, C = x.shape[0], x.shape[1]
    spatial = tuple(x.shape[2:])
    P = int(math.prod(spatial))
    h = x.reshape(N, C, P).astype(jnp.float32)
    for (wT, _b, gamma, beta) in mlp.params:
        y = jnp.einsum('oc,ncp->nop', wT.astype(jnp.bfloat16), h.astype(jnp.bfloat16),
                       preferred_element_type=jnp.float32)
        mean = jnp.mean(y, axis=(0, 2), keepdims=True)
        var = jnp.mean((y - mean) ** 2, axis=(0, 2), keepdims=True)
        scale = gamma[None, :, None] * jax.lax.rsqrt(var + EPS)
        shift = beta[None, :, None] - mean * scale
        y_q = y.astype(jnp.bfloat16).astype(jnp.float32)   # layer-boundary bf16 storage
        h = jnp.maximum(y_q * scale + shift, 0.0)
    return h.reshape((N, h.shape[1]) + spatial)


def _check(out, ref, name):
    diff = jnp.abs(out - ref)
    mean_err = float(jnp.mean(diff))
    max_err = float(jnp.max(diff))
    # max tolerance allows the occasional single-ulp bf16 rounding flip between the
    # MXU path and the XLA reference; mean tolerance catches systematic errors.
    assert mean_err < 1e-3 and max_err < 5e-2, (name, mean_err, max_err)


if __name__ == "__main__":
    key = jax.random.PRNGKey(0)
    k1, k2, k3 = jax.random.split(key, 3)

    # dim=1: (N=2, C=4, L=256), two layers -> un-padded tiles, fused BN/ReLU preact
    x1 = jax.random.normal(k1, (2, 4, 256), jnp.float32)
    mlp1 = SharedMLPPallas(4, [32, 32], dim=1, key=k2)
    out1 = jax.block_until_ready(mlp1(x1))
    assert out1.shape == (2, 32, 256), out1.shape
    ref1 = _reference_forward(mlp1, x1)
    _check(out1, ref1, "dim1")

    # dim=2 + tuple pass-through: (N=2, C=4, H=8, W=8), two layers
    # -> padded P (64 -> 128), pl.when-gated masked stats, fused BN/ReLU
    x2 = jax.random.normal(k3, (2, 4, 8, 8), jnp.float32)
    extra = jnp.arange(5, dtype=jnp.float32)
    mlp2 = SharedMLPPallas(4, [16, 16], dim=2, key=jax.random.PRNGKey(1))
    out2, extra_out = mlp2((x2, extra))
    out2 = jax.block_until_ready(out2)
    assert out2.shape == (2, 16, 8, 8), out2.shape
    assert extra_out is extra
    ref2 = _reference_forward(mlp2, x2)
    _check(out2, ref2, "dim2")

    print("KERNEL_OK")
</pallas_src>

<mosaic_0001>
module attributes {stable_mosaic.version = 11 : i64} {
  func.func @kernel(%arg0: i32, %arg1: i32, %arg2: memref<1x4x256xbf16, #tpu.memory_space<vmem>>, %arg3: memref<32x4xbf16, #tpu.memory_space<vmem>>, %arg4: memref<1x32x256xbf16, #tpu.memory_space<vmem>>, %arg5: memref<1x1x32x2xf32, #tpu.memory_space<vmem>>) attributes {dimension_semantics = [#tpu.dimension_semantics<parallel>, #tpu.dimension_semantics<parallel>], iteration_bounds = array<i64: 2, 1>, scalar_prefetch = 0 : i64, scratch_operands = 0 : i64, tpu.core_type = #tpu.core_type<tc>, window_params = [{transform_indices = @transform_0, window_bounds = array<i64: 1, 4, 256>}, {pipeline_mode = #tpu.pipeline_mode<synchronous>, transform_indices = @transform_1, window_bounds = array<i64: 32, 4>}, {transform_indices = @transform_2, window_bounds = array<i64: 1, 32, 256>}, {transform_indices = @transform_3, window_bounds = array<i64: 1, 1, 32, 2>}]} {
    %c0 = arith.constant 0 : index
    %c0_0 = arith.constant 0 : index
    %c0_1 = arith.constant 0 : index
    %0 = vector.load %arg2[%c0, %c0_0, %c0_1] : memref<1x4x256xbf16, #tpu.memory_space<vmem>>, vector<1x4x256xbf16>
    %1 = vector.shape_cast %0 : vector<1x4x256xbf16> to vector<4x256xbf16>
    %c0_2 = arith.constant 0 : index
    %c0_3 = arith.constant 0 : index
    %2 = vector.load %arg3[%c0_2, %c0_3] : memref<32x4xbf16, #tpu.memory_space<vmem>>, vector<32x4xbf16>
    %cst = arith.constant dense<0.000000e+00> : vector<32x256xf32>
    %3 = tpu.matmul %2, %1, %cst {dimension_numbers = #tpu.dot_dimension_numbers<[1], [0], [0], [1], [0, 0, 1, 1], [], []>} : vector<32x4xbf16>, vector<4x256xbf16>, vector<32x256xf32> -> vector<32x256xf32>
    %cst_4 = arith.constant dense<0.000000e+00> : vector<32xf32>
    %4 = vector.multi_reduction <add>, %3, %cst_4 [1] : vector<32x256xf32> to vector<32xf32>
    %5 = vector.shape_cast %4 : vector<32xf32> to vector<32x1xf32>
    %6 = arith.mulf %3, %3 : vector<32x256xf32>
    %cst_5 = arith.constant dense<0.000000e+00> : vector<32xf32>
    %7 = vector.multi_reduction <add>, %6, %cst_5 [1] : vector<32x256xf32> to vector<32xf32>
    %8 = vector.shape_cast %7 : vector<32xf32> to vector<32x1xf32>
    %9 = tpu.concatenate %5, %8 in 1 : vector<32x1xf32>, vector<32x1xf32> -> vector<32x2xf32>
    %c0_6 = arith.constant 0 : index
    %c0_7 = arith.constant 0 : index
    %c0_8 = arith.constant 0 : index
    %c0_9 = arith.constant 0 : index
    %10 = vector.load %arg5[%c0_6, %c0_7, %c0_8, %c0_9] : memref<1x1x32x2xf32, #tpu.memory_space<vmem>>, vector<1x1x32x2xf32>
    %11 = vector.shape_cast %10 : vector<1x1x32x2xf32> to vector<32x2xf32>
    %12 = vector.shape_cast %9 : vector<32x2xf32> to vector<1x1x32x2xf32>
    tpu.vector_store %arg5[%c0_6, %c0_7, %c0_8, %c0_9], %12 {strides = array<i32>} : memref<1x1x32x2xf32, #tpu.memory_space<vmem>>, vector<1x1x32x2xf32>,
    %13 = arith.truncf %3 : vector<32x256xf32> to vector<32x256xbf16>
    %c0_10 = arith.constant 0 : index
    %c0_11 = arith.constant 0 : index
    %c0_12 = arith.constant 0 : index
    %14 = vector.load %arg4[%c0_10, %c0_11, %c0_12] : memref<1x32x256xbf16, #tpu.memory_space<vmem>>, vector<1x32x256xbf16>
    %15 = vector.shape_cast %14 : vector<1x32x256xbf16> to vector<32x256xbf16>
    %16 = vector.shape_cast %13 : vector<32x256xbf16> to vector<1x32x256xbf16>
    tpu.vector_store %arg4[%c0_10, %c0_11, %c0_12], %16 {strides = array<i32>} : memref<1x32x256xbf16, #tpu.memory_space<vmem>>, vector<1x32x256xbf16>,
    return
  }
  func.func @transform_0(%arg0: i32, %arg1: i32) -> (i32, i32, i32) {
    %c0_i32 = arith.constant 0 : i32
    %c0_i32_0 = arith.constant 0 : i32
    return %arg0, %c0_i32, %arg1 : i32, i32, i32
  }
  func.func @transform_1(%arg0: i32, %arg1: i32) -> (i32, i32) {
    %c0_i32 = arith.constant 0 : i32
    %c0_i32_0 = arith.constant 0 : i32
    %c0_i32_1 = arith.constant 0 : i32
    return %c0_i32, %c0_i32_0 : i32, i32
  }
  func.func @transform_2(%arg0: i32, %arg1: i32) -> (i32, i32, i32) {
    %c0_i32 = arith.constant 0 : i32
    %c0_i32_0 = arith.constant 0 : i32
    return %arg0, %c0_i32, %arg1 : i32, i32, i32
  }
  func.func @transform_3(%arg0: i32, %arg1: i32) -> (i32, i32, i32, i32) {
    %c0_i32 = arith.constant 0 : i32
    %c0_i32_0 = arith.constant 0 : i32
    %c0_i32_1 = arith.constant 0 : i32
    return %arg0, %arg1, %c0_i32, %c0_i32_0 : i32, i32, i32, i32
  }
}

module attributes {stable_mosaic.version = 11 : i64} {
  func.func @kernel(%arg0: i32, %arg1: i32, %arg2: memref<1x32x256xbf16, #tpu.memory_space<vmem>>, %arg3: memref<32x32xbf16, #tpu.memory_space<vmem>>, %arg4: memref<32x1xf32, #tpu.memory_space<vmem>>, %arg5: memref<32x1xf32, #tpu.memory_space<vmem>>, %arg6: memref<1x32x256xbf16, #tpu.memory_space<vmem>>, %arg7: memref<1x1x32x2xf32, #tpu.memory_space<vmem>>) attributes {dimension_semantics = [#tpu.dimension_semantics<parallel>, #tpu.dimension_semantics<parallel>], iteration_bounds = array<i64: 2, 1>, scalar_prefetch = 0 : i64, scratch_operands = 0 : i64, tpu.core_type = #tpu.core_type<tc>, window_params = [{transform_indices = @transform_0, window_bounds = array<i64: 1, 32, 256>}, {pipeline_mode = #tpu.pipeline_mode<synchronous>, transform_indices = @transform_1, window_bounds = array<i64: 32, 32>}, {pipeline_mode = #tpu.pipeline_mode<synchronous>, transform_indices = @transform_2, window_bounds = array<i64: 32, 1>}, {pipeline_mode = #tpu.pipeline_mode<synchronous>, transform_indices = @transform_3, window_bounds = array<i64: 32, 1>}, {transform_indices = @transform_4, window_bounds = array<i64: 1, 32, 256>}, {transform_indices = @transform_5, window_bounds = array<i64: 1, 1, 32, 2>}]} {
    %c0 = arith.constant 0 : index
    %c0_0 = arith.constant 0 : index
    %c0_1 = arith.constant 0 : index
    %0 = vector.load %arg2[%c0, %c0_0, %c0_1] : memref<1x32x256xbf16, #tpu.memory_space<vmem>>, vector<1x32x256xbf16>
    %1 = vector.shape_cast %0 : vector<1x32x256xbf16> to vector<32x256xbf16>
    %2 = arith.extf %1 : vector<32x256xbf16> to vector<32x256xf32>
    %c0_2 = arith.constant 0 : index
    %c0_3 = arith.constant 0 : index
    %3 = vector.load %arg4[%c0_2, %c0_3] : memref<32x1xf32, #tpu.memory_space<vmem>>, vector<32x1xf32>
    %4 = vector.broadcast %3 : vector<32x1xf32> to vector<32x256xf32>
    %5 = arith.mulf %2, %4 : vector<32x256xf32>
    %c0_4 = arith.constant 0 : index
    %c0_5 = arith.constant 0 : index
    %6 = vector.load %arg5[%c0_4, %c0_5] : memref<32x1xf32, #tpu.memory_space<vmem>>, vector<32x1xf32>
    %7 = vector.broadcast %6 : vector<32x1xf32> to vector<32x256xf32>
    %8 = arith.addf %5, %7 : vector<32x256xf32>
    %cst = arith.constant 0.000000e+00 : f32
    %9 = vector.broadcast %cst : f32 to vector<32x256xf32>
    %10 = arith.maximumf %8, %9 : vector<32x256xf32>
    %11 = arith.truncf %10 : vector<32x256xf32> to vector<32x256xbf16>
    %c0_6 = arith.constant 0 : index
    %c0_7 = arith.constant 0 : index
    %12 = vector.load %arg3[%c0_6, %c0_7] : memref<32x32xbf16, #tpu.memory_space<vmem>>, vector<32x32xbf16>
    %cst_8 = arith.constant dense<0.000000e+00> : vector<32x256xf32>
    %13 = tpu.matmul %12, %11, %cst_8 {dimension_numbers = #tpu.dot_dimension_numbers<[1], [0], [0], [1], [0, 0, 1, 1], [], []>} : vector<32x32xbf16>, vector<32x256xbf16>, vector<32x256xf32> -> vector<32x256xf32>
    %cst_9 = arith.constant dense<0.000000e+00> : vector<32xf32>
    %14 = vector.multi_reduction <add>, %13, %cst_9 [1] : vector<32x256xf32> to vector<32xf32>
    %15 = vector.shape_cast %14 : vector<32xf32> to vector<32x1xf32>
    %16 = arith.mulf %13, %13 : vector<32x256xf32>
    %cst_10 = arith.constant dense<0.000000e+00> : vector<32xf32>
    %17 = vector.multi_reduction <add>, %16, %cst_10 [1] : vector<32x256xf32> to vector<32xf32>
    %18 = vector.shape_cast %17 : vector<32xf32> to vector<32x1xf32>
    %19 = tpu.concatenate %15, %18 in 1 : vector<32x1xf32>, vector<32x1xf32> -> vector<32x2xf32>
    %c0_11 = arith.constant 0 : index
    %c0_12 = arith.constant 0 : index
    %c0_13 = arith.constant 0 : index
    %c0_14 = arith.constant 0 : index
    %20 = vector.load %arg7[%c0_11, %c0_12, %c0_13, %c0_14] : memref<1x1x32x2xf32, #tpu.memory_space<vmem>>, vector<1x1x32x2xf32>
    %21 = vector.shape_cast %20 : vector<1x1x32x2xf32> to vector<32x2xf32>
    %22 = vector.shape_cast %19 : vector<32x2xf32> to vector<1x1x32x2xf32>
    tpu.vector_store %arg7[%c0_11, %c0_12, %c0_13, %c0_14], %22 {strides = array<i32>} : memref<1x1x32x2xf32, #tpu.memory_space<vmem>>, vector<1x1x32x2xf32>,
    %23 = arith.truncf %13 : vector<32x256xf32> to vector<32x256xbf16>
    %c0_15 = arith.constant 0 : index
    %c0_16 = arith.constant 0 : index
    %c0_17 = arith.constant 0 : index
    %24 = vector.load %arg6[%c0_15, %c0_16, %c0_17] : memref<1x32x256xbf16, #tpu.memory_space<vmem>>, vector<1x32x256xbf16>
    %25 = vector.shape_cast %24 : vector<1x32x256xbf16> to vector<32x256xbf16>
    %26 = vector.shape_cast %23 : vector<32x256xbf16> to vector<1x32x256xbf16>
    tpu.vector_store %arg6[%c0_15, %c0_16, %c0_17], %26 {strides = array<i32>} : memref<1x32x256xbf16, #tpu.memory_space<vmem>>, vector<1x32x256xbf16>,
    return
  }
  func.func @transform_0(%arg0: i32, %arg1: i32) -> (i32, i32, i32) {
    %c0_i32 = arith.constant 0 : i32
    %c0_i32_0 = arith.constant 0 : i32
    return %arg0, %c0_i32, %arg1 : i32, i32, i32
  }
  func.func @transform_1(%arg0: i32, %arg1: i32) -> (i32, i32) {
    %c0_i32 = arith.constant 0 : i32
    %c0_i32_0 = arith.constant 0 : i32
    %c0_i32_1 = arith.constant 0 : i32
    return %c0_i32, %c0_i32_0 : i32, i32
  }
  func.func @transform_2(%arg0: i32, %arg1: i32) -> (i32, i32) {
    %c0_i32 = arith.constant 0 : i32
    %c0_i32_0 = arith.constant 0 : i32
    %c0_i32_1 = arith.constant 0 : i32
    return %c0_i32, %c0_i32_0 : i32, i32
  }
  func.func @transform_3(%arg0: i32, %arg1: i32) -> (i32, i32) {
    %c0_i32 = arith.constant 0 : i32
    %c0_i32_0 = arith.constant 0 : i32
    %c0_i32_1 = arith.constant 0 : i32
    return %c0_i32, %c0_i32_0 : i32, i32
  }
  func.func @transform_4(%arg0: i32, %arg1: i32) -> (i32, i32, i32) {
    %c0_i32 = arith.constant 0 : i32
    %c0_i32_0 = arith.constant 0 : i32
    return %arg0, %c0_i32, %arg1 : i32, i32, i32
  }
  func.func @transform_5(%arg0: i32, %arg1: i32) -> (i32, i32, i32, i32) {
    %c0_i32 = arith.constant 0 : i32
    %c0_i32_0 = arith.constant 0 : i32
    %c0_i32_1 = arith.constant 0 : i32
    return %arg0, %arg1, %c0_i32, %c0_i32_0 : i32, i32, i32, i32
  }
}

module attributes {stable_mosaic.version = 11 : i64} {
  func.func @_bn_relu_kernel(%arg0: i32, %arg1: i32, %arg2: memref<1x32x256xbf16, #tpu.memory_space<vmem>>, %arg3: memref<32x1xf32, #tpu.memory_space<vmem>>, %arg4: memref<32x1xf32, #tpu.memory_space<vmem>>, %arg5: memref<1x32x256xf32, #tpu.memory_space<vmem>>) attributes {dimension_semantics = [#tpu.dimension_semantics<parallel>, #tpu.dimension_semantics<parallel>], iteration_bounds = array<i64: 2, 1>, scalar_prefetch = 0 : i64, scratch_operands = 0 : i64, tpu.core_type = #tpu.core_type<tc>, window_params = [{transform_indices = @transform_0, window_bounds = array<i64: 1, 32, 256>}, {pipeline_mode = #tpu.pipeline_mode<synchronous>, transform_indices = @transform_1, window_bounds = array<i64: 32, 1>}, {pipeline_mode = #tpu.pipeline_mode<synchronous>, transform_indices = @transform_2, window_bounds = array<i64: 32, 1>}, {transform_indices = @transform_3, window_bounds = array<i64: 1, 32, 256>}]} {
    %c0 = arith.constant 0 : index
    %c0_0 = arith.constant 0 : index
    %c0_1 = arith.constant 0 : index
    %0 = vector.load %arg2[%c0, %c0_0, %c0_1] : memref<1x32x256xbf16, #tpu.memory_space<vmem>>, vector<1x32x256xbf16>
    %1 = vector.shape_cast %0 : vector<1x32x256xbf16> to vector<32x256xbf16>
    %2 = arith.extf %1 : vector<32x256xbf16> to vector<32x256xf32>
    %c0_2 = arith.constant 0 : index
    %c0_3 = arith.constant 0 : index
    %3 = vector.load %arg3[%c0_2, %c0_3] : memref<32x1xf32, #tpu.memory_space<vmem>>, vector<32x1xf32>
    %4 = vector.broadcast %3 : vector<32x1xf32> to vector<32x256xf32>
    %5 = arith.mulf %2, %4 : vector<32x256xf32>
    %c0_4 = arith.constant 0 : index
    %c0_5 = arith.constant 0 : index
    %6 = vector.load %arg4[%c0_4, %c0_5] : memref<32x1xf32, #tpu.memory_space<vmem>>, vector<32x1xf32>
    %7 = vector.broadcast %6 : vector<32x1xf32> to vector<32x256xf32>
    %8 = arith.addf %5, %7 : vector<32x256xf32>
    %cst = arith.constant 0.000000e+00 : f32
    %9 = vector.broadcast %cst : f32 to vector<32x256xf32>
    %10 = arith.maximumf %8, %9 : vector<32x256xf32>
    %c0_6 = arith.constant 0 : index
    %c0_7 = arith.constant 0 : index
    %c0_8 = arith.constant 0 : index
    %11 = vector.load %arg5[%c0_6, %c0_7, %c0_8] : memref<1x32x256xf32, #tpu.memory_space<vmem>>, vector<1x32x256xf32>
    %12 = vector.shape_cast %11 : vector<1x32x256xf32> to vector<32x256xf32>
    %13 = vector.shape_cast %10 : vector<32x256xf32> to vector<1x32x256xf32>
    tpu.vector_store %arg5[%c0_6, %c0_7, %c0_8], %13 {strides = array<i32>} : memref<1x32x256xf32, #tpu.memory_space<vmem>>, vector<1x32x256xf32>,
    return
  }
  func.func @transform_0(%arg0: i32, %arg1: i32) -> (i32, i32, i32) {
    %c0_i32 = arith.constant 0 : i32
    %c0_i32_0 = arith.constant 0 : i32
    return %arg0, %c0_i32, %arg1 : i32, i32, i32
  }
  func.func @transform_1(%arg0: i32, %arg1: i32) -> (i32, i32) {
    %c0_i32 = arith.constant 0 : i32
    %c0_i32_0 = arith.constant 0 : i32
    %c0_i32_1 = arith.constant 0 : i32
    return %c0_i32, %c0_i32_0 : i32, i32
  }
  func.func @transform_2(%arg0: i32, %arg1: i32) -> (i32, i32) {
    %c0_i32 = arith.constant 0 : i32
    %c0_i32_0 = arith.constant 0 : i32
    %c0_i32_1 = arith.constant 0 : i32
    return %c0_i32, %c0_i32_0 : i32, i32
  }
  func.func @transform_3(%arg0: i32, %arg1: i32) -> (i32, i32, i32) {
    %c0_i32 = arith.constant 0 : i32
    %c0_i32_0 = arith.constant 0 : i32
    return %arg0, %c0_i32, %arg1 : i32, i32, i32
  }
}

</mosaic_0001>

<bundles_post_ra>
// kernel: _forward_impl.3
= control target key start
LH: loop header
LB: loop body
LE: loop exit
PB: predicated region body
PF: predicated region fallthrough
CT: control target
= control target key end

     0   :  { %s639_s12 = smov 0   ;;  %s641_s13 = smov 0   ;;  %s689_s0 = inlined_call_operand.vmem [shape: bf16[2,4,256], index: 0, kind: input, shape index: {}]   ;;  %s690_s1 = inlined_call_operand.vmem [shape: bf16[32,4], index: 1, kind: input, shape index: {}]   ;;  %s691_s2 = inlined_call_operand.vmem [shape: bf16[2,32,256], index: 2, kind: output, shape index: {0}]   ;;  %s692_s3 = inlined_call_operand.vmem [shape: f32[2,1,32,2], index: 3, kind: output, shape index: {1}]  }
   0x1   :  { %s643_s14 = smov 0  }
   0x2 LB: > { %s26_s15 = sadd.s32 1, %s612_s13  ;;  %p539_p0 = scmp.ge.s32.totalorder %s616_s14, 1  ;;  %s616_s14 = sphi %s643_s14, %s14_s14   ;;  %s612_s13 = sphi %s641_s13, %s694_s13   ;;  %s608_s12 = sphi %s639_s12, %s693_s12  }
   0x3   : > { %p28_p1 = scmp.ge.s32.totalorder %s26_s15, 2  ;;  %p163_p2 = scmp.lt.s32.totalorder %s616_s14, 3 }
   0x5   : > { %s696_s15 = smov (%p28_p1, %s26_s15), 0  ;;  %p164_p3 = pnand %p539_p0, %p163_p2 }
   0x6   : > { %p205_p4 = scmp.lt.s32.totalorder (!%p164_p3), %s608_s12, 1  ;;  %v618_v0 = vmov (!%p164_p3), 0   ;;  %vm265_vm0 = vcmask (!%p164_p3), 1041408   ;;  %v592_v4 = vld [vmem:[%s690_s1] sm:$0xff] (!%p164_p3)   ;;  %v593_v5 = vld [vmem:[%s690_s1 + $0x8] sm:$0xff] (!%p164_p3)   ;;  %vm258_vm1 = vcmask (!%p164_p3), 31744  }
   0x7   : > { %167 = sbr.rel (%p164_p3) target bundleno = 396 (0x18c), region = 28  ;;  %304 = vmatprep.mubr.bf16.mxu0 (!%p164_p3), %v618_v0  ;;  %314 = vmatprep.mubr.bf16.mxu1 (!%p164_p3), %v618_v0  ;;  %vm357_vm2 = vcmask (!%p164_p3), 7168   ;;  %vm362_vm3 = vcmask (!%p164_p3), 15360  }
   0xe   : > { %s698_s12 = smov (!%p205_p4, %s608_s12), 1 }
   0xf   : > { %s558_s16 = sshll.u32 %s698_s12, 2  ;;  %s559_s24 = sshll.u32 %s698_s12, 5 }
  0x10   : > { %s212_s19 = scalar_lea.vmem %s689_s0, %s558_s16  ;;  %s222_s27 = scalar_lea.vmem %s691_s2, %s559_s24 }
  0x11   : > { %v548_v1 = vld.sshfl [vmem:[%s212_s19] sm:$0x33 pattern:$0x76325410]  ;;  %s232_s30 = scalar_lea.vmem %s692_s3, %s559_s24 }
  0x12   : > { %v257_v2 = vcombine.high %v548_v1, %v548_v1  ;;  %v267_v3 = vsel %vm265_vm0, %v548_v1, 0 }
  0x14   : > { %549 = vmatprep.subr.msk.bf16.mxu0 %vm265_vm0, %v257_v2  ;;  %565 = vmatprep.subr.msk.bf16.mxu1 %vm265_vm0, %v257_v2 }
  0x15   : > { %273 = vmatpush1.bf16.msra.mxu0 %v267_v3  ;;  %566 = vmatpush1.bf16.msra.mxu1 %v267_v3 }
  0x18   : > { %550 = vmatmul.mubr.msk.bf16.vlgmr.msra.gmra.mrb[0].mxu0 %vm258_vm1, %v592_v4  ;;  %551 = vmatmul.mubr.msk.bf16.vlgmr.msra.gmra.mrb[0].mxu1 %vm258_vm1, %v593_v5 }
  0xeb   : > { %v306_v6 = vpop.f32.mrb[0].mxu0  ;;  %v316_v7 = vpop.f32.mrb[0].mxu1 }
  0xec   : > { %v308_v8 = vpop.f32.mrb[1].mxu0  ;;  %v318_v9 = vpop.f32.mrb[1].mxu1  ;;  %v337_v10 = vmul.f32 %v306_v6, %v306_v6  ;;  %v341_v11 = vmul.f32 %v316_v7, %v316_v7 }
  0xed   : > { %v561_v12 = vpack.c.bf16 %v308_v8, %v306_v6  ;;  %v563_v13 = vpack.c.bf16 %v318_v9, %v316_v7  ;;  %v310_v14 = vpop.f32.mrb[2].mxu0  ;;  %v320_v15 = vpop.f32.mrb[2].mxu1  ;;  %v331_v16 = vadd.f32 %v318_v9, %v316_v7  ;;  %v325_v17 = vadd.f32 %v308_v8, %v306_v6 }
  0xee   : > { %v312_v18 = vpop.f32.mrb[3].mxu0  ;;  %v322_v19 = vpop.f32.mrb[3].mxu1  ;;  %v339_v20 = vmul.f32 %v310_v14, %v310_v14  ;;  %v338_v21 = vmul.f32 %v308_v8, %v308_v8  ;;  %v343_v22 = vmul.f32 %v320_v15, %v320_v15  ;;  %v342_v23 = vmul.f32 %v318_v9, %v318_v9 }
  0xef   : > { %391 = vst [vmem:[%s222_s27] sm:$0xff] %v561_v12  ;;  %393 = vst [vmem:[%s222_s27 + $0x10] sm:$0xff] %v563_v13  ;;  %v340_v24 = vmul.f32 %v312_v18, %v312_v18  ;;  %v562_v25 = vpack.c.bf16 %v312_v18, %v310_v14  ;;  %v344_v26 = vmul.f32 %v322_v19, %v322_v19  ;;  %332 = vadd.xlane.f32.xlu1 %v331_v16 }
  0xf0   : > { %v564_v27 = vpack.c.bf16 %v322_v19, %v320_v15  ;;  %326 = vadd.xlane.f32.xlu0 %v325_v17  ;;  %v334_v28 = vadd.f32 %v322_v19, %v320_v15  ;;  %v328_v29 = vadd.f32 %v312_v18, %v310_v14  ;;  %v345_v30 = vadd.f32 %v338_v21, %v337_v10 }
  0xf1   : > { %v351_v31 = vadd.f32 %v342_v23, %v341_v11  ;;  %392 = vst [vmem:[%s222_s27 + $0x8] sm:$0xff] %v562_v25  ;;  %v348_v32 = vadd.f32 %v340_v24, %v339_v20  ;;  %v354_v33 = vadd.f32 %v344_v26, %v343_v22 }
  0xf2   : > { %394 = vst [vmem:[%s222_s27 + $0x18] sm:$0xff] %v564_v27 }
  0xf3   : > { %335 = vadd.xlane.f32.xlu1 %v334_v28 }
  0xf4   : > { %329 = vadd.xlane.f32.xlu0 %v328_v29 }
  0xf7   : > { %349 = vadd.xlane.f32.xlu1 %v348_v32 }
  0xf8   : > { %346 = vadd.xlane.f32.xlu0 %v345_v30 }
  0xfb   : > { %355 = vadd.xlane.f32.xlu1 %v354_v33 }
  0xfc   : > { %352 = vadd.xlane.f32.xlu0 %v351_v31 }
 0x17c   : > { %v333_v34 = vpop.xlane.xlu1 %332 }
 0x17d   : > { %v327_v35 = vpop.xlane.xlu0 %326 }
 0x180   : > { %v336_v36 = vpop.xlane.xlu1 %335 }
 0x181   : > { %v330_v37 = vpop.xlane.xlu0 %329 }
 0x184   : > { %v350_v38 = vpop.xlane.xlu1 %349 }
 0x185   : > { %v359_v39 = vsel %vm357_vm2, %v330_v37, %v350_v38  ;;  %v347_v40 = vpop.xlane.xlu0 %346 }
 0x186   : > { %364 = vst.msk [vmem:[%s232_s30 + $0x8] sm:$0xff] %vm362_vm3, %v359_v39  ;;  %v358_v41 = vsel %vm357_vm2, %v327_v35, %v347_v40 }
 0x187   : > { %363 = vst.msk [vmem:[%s232_s30] sm:$0xff] %vm362_vm3, %v358_v41 }
 0x188   : > { %v356_v42 = vpop.xlane.xlu1 %355 }
 0x189   : > { %v361_v43 = vsel %vm357_vm2, %v336_v36, %v356_v42  ;;  %v353_v44 = vpop.xlane.xlu0 %352 }
 0x18a   : > { %366 = vst.msk [vmem:[%s232_s30 + $0x18] sm:$0xff] %vm362_vm3, %v361_v43  ;;  %v360_v45 = vsel %vm357_vm2, %v333_v34, %v353_v44 }
 0x18b   : > { %365 = vst.msk [vmem:[%s232_s30 + $0x10] sm:$0xff] %vm362_vm3, %v360_v45 }
 0x18c PF: > { %s14_s14 = sadd.s32 1, %s616_s14   ;;  %s693_s12 = smov %s612_s13 }
 0x18d   : > { %p11_p5 = scmp.ge.s32.totalorder %s14_s14, 4   ;;  %s694_s13 = smov %s696_s15 }
 0x18f   :  { %13 = sbr.rel (!%p11_p5) target bundleno = 2 (0x2), region = 70 }

// kernel: _forward_impl.5
= control target key start
LH: loop header
LB: loop body
LE: loop exit
PB: predicated region body
PF: predicated region fallthrough
CT: control target
= control target key end

     0   :  { %8 = vsyncpa [#allocation3], 0  ;;  %s709_s0 = inlined_call_operand.vmem [shape: bf16[2,32,256], index: 0, kind: input, shape index: {}]   ;;  %s710_s1 = inlined_call_operand.vmem [shape: f32[32,1], index: 1, kind: input, shape index: {}]   ;;  %s711_s2 = inlined_call_operand.vmem [shape: f32[32,1], index: 2, kind: input, shape index: {}]   ;;  %s712_s3 = inlined_call_operand.hbm [shape: f32[2,32,256], index: 3, kind: output, shape index: {}]  }
   0x1   :  { %10 = vsyncpa [#allocation3 + $0x1], 0  ;;  %s566_s12 = smov 0   ;;  %s568_s13 = smov 0  }
   0x2   :  { %s570_s14 = smov 0   ;;  %s572_s15 = smov 0  }
   0x3   :  { %s574_s16 = smov 0   ;;  %s576_s17 = smov 0  }
   0x4 LB: > { %s387_s18 = sadd.s32 4294967295, %s540_s17   ;;  %s388_s19 = sadd.s32 4294967294, %s540_s17   ;;  %s540_s17 = sphi %s576_s17, %s16_s17   ;;  %s536_s16 = sphi %s574_s16, %s719_s16   ;;  %s532_s15 = sphi %s572_s15, %s718_s15   ;;  %s528_s14 = sphi %s570_s14, %s717_s14   ;;  %s524_s13 = sphi %s568_s13, %s716_s13   ;;  %s520_s12 = sphi %s566_s12, %s715_s12  }
   0x5   : > { %s28_s20 = sadd.s32 1, %s536_s16  ;;  %s107_s21 = sadd.s32 1, %s528_s14 }
   0x6   : > { %p30_p0 = scmp.ge.s32.totalorder %s28_s20, 2  ;;  %p117_p1 = scmp.ne.s32.totalorder %s528_s14, %s524_s13 }
   0x7   : > { %p118_p2 = scmp.eq.s32.totalorder %s387_s18, 1  ;;  %p123_p3 = scmp.ne.s32.totalorder %s524_s13, %s520_s12 }
   0x8   : > { %s721_s20 = smov (%p30_p0, %s28_s20), 0  ;;  %p124_p5 = scmp.eq.s32.totalorder %s388_s19, 1 }
   0x9   : > { %p606_p4 = por %p118_p2, %p117_p1  ;;  %s102_s23 = ssub.s32 %s536_s16, %s721_s20 }
   0xa   : > { %p391_p6 = scmp.ge.s32.totalorder %s540_s17, 1  ;;  %p105_p7 = scmp.eq.s32.totalorder %s102_s23, 0 }
   0xb   : > { %p613_p8 = por %p124_p5, %p123_p3  ;;  %p161_p9 = scmp.lt.s32.totalorder %s540_s17, 3 }
   0xc   : > { %s619_s25 = scalar_select %p105_p7, %s528_s14, %s107_s21  }
   0xd   : > { %p162_p10 = pnand %p391_p6, %p161_p9 }
   0xe   : > { %v214_v0 = vld [vmem:[%s710_s1 + $0x10] sm:$0xff] (!%p162_p10)  ;;  %v212_v1 = vld [vmem:[%s710_s1] sm:$0xff] (!%p162_p10)  ;;  %v542_v2 = vmov (!%p162_p10), 0   ;;  %v215_v3 = vld [vmem:[%s710_s1 + $0x18] sm:$0xff] (!%p162_p10)  ;;  %p190_p11 = scmp.lt.s32.totalorder (!%p162_p10), %s532_s15, 1  ;;  %s186_s30 = sand.u32 (!%p162_p10), 1, %s524_s13  }
   0xf   : > { %165 = sbr.rel (%p162_p10) target bundleno = 176 (0xb0), region = 32  ;;  %461 = vset.pattern.permute.xlu1 (!%p162_p10), %v542_v2  ;;  %460 = vset.pattern.permute.xlu0 (!%p162_p10), %v542_v2  ;;  %v213_v4 = vld [vmem:[%s710_s1 + $0x8] sm:$0xff] (!%p162_p10)  ;;  %v244_v6 = vld [vmem:[%s711_s2] sm:$0xff] (!%p162_p10)  ;;  %v247_v7 = vld [vmem:[%s711_s2 + $0x18] sm:$0xff] (!%p162_p10)  ;;  %s392_s4 = sshll.u32 (!%p162_p10), %s186_s30, 6 }
  0x10   : > { %228 = vperm.xlu1 (!%p162_p10), %461, %v214_v0   ;;  %218 = vperm.xlu0 (!%p162_p10), %460, %v212_v1   ;;  %v245_v5 = vld [vmem:[%s711_s2 + $0x8] sm:$0xff] (!%p162_p10)  ;;  %v246_v8 = vld [vmem:[%s711_s2 + $0x10] sm:$0xff] (!%p162_p10)  ;;  %s401_s5 = sshll.u32 (!%p162_p10), %s532_s15, 10  ;;  %s188_s6 = scalar_lea.vmem (!%p162_p10), [#allocation2], %s392_s4 }
  0x11   : > { %s308_s7 = sshll.u32 (!%p162_p10), %s188_s6, 4  ;;  %s657_s10 = scalar_lea.hbm (!%p162_p10), %s712_s3, %s401_s5  ;;  %s659_s7 = int_to_ptr.vmem [resolvable:$true] %s308_s7 }
  0x12   : > { %s462_s11 = scalar_lea.vmem (!%p162_p10), %s659_s7, 1024  ;;  %s543_s18 = smov (!%p162_p10), [#allocation2]  }
  0x13   : > { %p463_p12 = scmp.ne.s32.totalorder (!%p162_p10), %s659_s7, %s462_s11  ;;  %s466_s19 = sshll.u32 (!%p162_p10), %s543_s18, 4  ;;  %s467_s19 = int_to_ptr.vmem [resolvable:$false] %s466_s19 }
  0x14   : > { %233 = vperm.xlu1 (!%p162_p10), %461, %v215_v3   ;;  %223 = vperm.xlu0 (!%p162_p10), %460, %v213_v4   ;;  %s468_s21 = scalar_lea.vmem (!%p162_p10), %s467_s19, 2048  ;;  %p469_p1 = scmp.lt.s32.totalorder (!%p162_p10), %s659_s7, %s467_s19 }
  0x15   : > { %p464_p13 = pnand (!%p162_p10), %p463_p12, %p606_p4  ;;  %p470_p2 = scmp.lt.s32.totalorder (!%p162_p10), %s468_s21, %s462_s11 }
  0x16   : > { %s191_s23 = scalar_select %p190_p11, %s532_s15, 1 }
  0x17   : > { %s663_s15 = scalar_lea.sflag [#allocation3], %s186_s30  ;;  %p465_p0 = pneg %p464_p13 }
  0x18   : > { %255 = vperm.xlu1 %461, %v245_v5   ;;  %250 = vperm.xlu0 %460, %v244_v6   ;;  %s400_s26 = sshll.u32 %s191_s23, 5  ;;  %p471_p3 = por %p470_p2, %p469_p1 }
  0x19   : > { %s197_s29 = scalar_lea.vmem %s709_s0, %s400_s26 }
  0x1a   : > { %v200_v11 = vld [vmem:[%s197_s29] sm:$0xff]  ;;  %v201_v12 = vld [vmem:[%s197_s29 + $0x8] sm:$0xff]  ;;  %v202_v13 = vld [vmem:[%s197_s29 + $0x10] sm:$0xff]  ;;  %p472_p5 = pnand %p471_p3, %p465_p0 }
  0x1b   : > { %v204_v14 = vunpack.c.l.bf16 %v200_v11  ;;  %v205_v15 = vunpack.c.h.bf16 %v200_v11  ;;  %v203_v16 = vld [vmem:[%s197_s29 + $0x18] sm:$0xff]  ;;  %v206_v17 = vunpack.c.l.bf16 %v201_v12  ;;  %v207_v18 = vunpack.c.h.bf16 %v201_v12 }
  0x1c   : > { %265 = vperm.xlu1 %461, %v247_v7   ;;  %260 = vperm.xlu0 %460, %v246_v8   ;;  %v208_v21 = vunpack.c.l.bf16 %v202_v13  ;;  %v209_v22 = vunpack.c.h.bf16 %v202_v13  ;;  %v210_v23 = vunpack.c.l.bf16 %v203_v16  ;;  %v211_v24 = vunpack.c.h.bf16 %v203_v16 }
  0x8f   : > { %v229_v9 = vpop.permute.xlu1 %228  ;;  %v219_v10 = vpop.permute.xlu0 %218 }
  0x90   : > { %v236_v25 = vmul.f32 %v219_v10, %v204_v14  ;;  %v237_v26 = vmul.f32 %v219_v10, %v205_v15  ;;  %v240_v35 = vmul.f32 %v229_v9, %v208_v21  ;;  %v241_v36 = vmul.f32 %v229_v9, %v209_v22 }
  0x93   : > { %v234_v19 = vpop.permute.xlu1 %233  ;;  %v224_v20 = vpop.permute.xlu0 %223 }
  0x94   : > { %v238_v27 = vmul.f32 %v224_v20, %v206_v17  ;;  %v239_v28 = vmul.f32 %v224_v20, %v207_v18  ;;  %v242_v37 = vmul.f32 %v234_v19, %v210_v23  ;;  %v243_v38 = vmul.f32 %v234_v19, %v211_v24 }
  0x97   : > { %v256_v29 = vpop.permute.xlu1 %255  ;;  %v251_v30 = vpop.permute.xlu0 %250 }
  0x98   : > { %v270_v31 = vadd.f32 %v256_v29, %v238_v27  ;;  %v271_v32 = vadd.f32 %v256_v29, %v239_v28  ;;  %v268_v33 = vadd.f32 %v251_v30, %v236_v25  ;;  %v269_v34 = vadd.f32 %v251_v30, %v237_v26 }
  0x9a   : > { %v278_v39 = vmax.f32 %v270_v31, 0.0  ;;  %v279_v40 = vmax.f32 %v271_v32, 0.0  ;;  %v276_v41 = vmax.f32 %v268_v33, 0.0  ;;  %v277_v42 = vmax.f32 %v269_v34, 0.0 }
  0x9b   : > { %v266_v43 = vpop.permute.xlu1 %265  ;;  %v261_v44 = vpop.permute.xlu0 %260 }
  0x9c   : > { %286 = vst [vmem:[%s188_s6 + $0x10] sm:$0xff] %v278_v39  ;;  %287 = vst [vmem:[%s188_s6 + $0x18] sm:$0xff] %v279_v40  ;;  %v274_v45 = vadd.f32 %v266_v43, %v242_v37  ;;  %v275_v46 = vadd.f32 %v266_v43, %v243_v38  ;;  %v272_v47 = vadd.f32 %v261_v44, %v240_v35 }
  0x9d   : > { %284 = vst [vmem:[%s188_s6] sm:$0xff] %v276_v41  ;;  %285 = vst [vmem:[%s188_s6 + $0x8] sm:$0xff] %v277_v42  ;;  %v273_v48 = vadd.f32 %v261_v44, %v241_v36 }
  0x9e   : > { %v282_v49 = vmax.f32 %v274_v45, 0.0  ;;  %v283_v50 = vmax.f32 %v275_v46, 0.0  ;;  %v280_v51 = vmax.f32 %v272_v47, 0.0 }
  0x9f   : > { %v281_v52 = vmax.f32 %v273_v48, 0.0 }
  0xa0   : > { %290 = vst [vmem:[%s188_s6 + $0x30] sm:$0xff] %v282_v49  ;;  %291 = vst [vmem:[%s188_s6 + $0x38] sm:$0xff] %v283_v50 }
  0xa1   : > { %288 = vst [vmem:[%s188_s6 + $0x20] sm:$0xff] %v280_v51  ;;  %289 = vst [vmem:[%s188_s6 + $0x28] sm:$0xff] %v281_v52 }
  0xa2   : > { %475 = shalt.err (!%p472_p5)
}
  0xa3   : > { %s476_s23 = scalar_lea.hbm %s657_s10, 1024  ;;  %s480_s28 = scalar_lea.hbm %s712_s3, 2048 }
  0xa4   : > { %p477_p6 = scmp.ne.s32.totalorder %s657_s10, %s476_s23  ;;  %p481_p10 = scmp.lt.u32.totalorder %s657_s10, %s712_s3 }
  0xa5   : > { %p482_p11 = scmp.lt.u32.totalorder %s480_s28, %s476_s23  ;;  %p484_p13 = scmp.lt.u32.totalorder %s476_s23, %s657_s10 }
  0xa6   : > { %p478_p7 = pnand %p477_p6, %p606_p4 }
  0xa7   : > { %p483_p12 = por %p482_p11, %p481_p10 }
  0xa8   : > { %p479_p9 = pneg %p478_p7 }
  0xa9   : > { %p485_p0 = por %p484_p13, %p483_p12 }
  0xab   : > { %p486_p1 = pnand %p485_p0, %p479_p9 }
  0xad   : > { %489 = shalt.err (!%p486_p1)
}
  0xae   : > { %s544_s4 = smov 256   ;;  %s545_s5 = smov 16  }
  0xaf   : > { %402 = dma.vmem_to_hbm [thread:$0]  (%p606_p4), %s659_s7, 1024, %s657_s10, %s663_s15, %s544_s4, %s544_s4, %s545_s5  }
  0xb0 PF: > { %p408_p2 = scmp.ge.s32.totalorder %s540_s17, 2  ;;  %s323_s6 = sand.u32 1, %s520_s12  }
  0xb1   : > { %s324_s8 = scalar_lea.sflag [#allocation3], %s323_s6 }
  0xb2   : > { %p405_p3 = pnand %p408_p2, %p613_p8 }
  0xb4   : > { %515 = dma.done.wait (!%p405_p3), %s324_s8, 1024  }
  0xb5   : > { %517 = vsyncadd (!%p405_p3), %s324_s8, 4294966272  ;;  %s16_s17 = sadd.s32 1, %s540_s17   ;;  %s715_s12 = smov %s524_s13 }
  0xb6   : > { %p13_p5 = scmp.ge.s32.totalorder %s16_s17, 4   ;;  %s716_s13 = smov %s528_s14 }
  0xb7   : > { %s717_s14 = smov %s619_s25  ;;  %s718_s15 = smov %s536_s16 }
  0xb8   : > { %s719_s16 = smov %s721_s20  ;;  %15 = sbr.rel (!%p13_p5) target bundleno = 4 (0x4), region = 67 }
  0xbf   :  { %329 = vsyncpa [#allocation3], 1 }
  0xc0   :  { %331 = vsyncpa [#allocation3 + $0x1], 1 }

// kernel: _forward_impl.4
= control target key start
LH: loop header
LB: loop body
LE: loop exit
PB: predicated region body
PF: predicated region fallthrough
CT: control target
= control target key end

     0   :  { %s776_s18 = smov 0   ;;  %s778_s19 = smov 0   ;;  %s851_s0 = inlined_call_operand.vmem [shape: bf16[2,32,256], index: 0, kind: input, shape index: {}]   ;;  %s852_s1 = inlined_call_operand.vmem [shape: bf16[32,32], index: 1, kind: input, shape index: {}]   ;;  %s853_s2 = inlined_call_operand.vmem [shape: f32[32,1], index: 2, kind: input, shape index: {}]   ;;  %s854_s3 = inlined_call_operand.vmem [shape: f32[32,1], index: 3, kind: input, shape index: {}]   ;;  %s855_s4 = inlined_call_operand.vmem [shape: bf16[2,32,256], index: 4, kind: output, shape index: {0}]   ;;  %s856_s5 = inlined_call_operand.vmem [shape: f32[2,1,32,2], index: 5, kind: output, shape index: {1}]  }
   0x1   :  { %s780_s20 = smov 0  }
   0x2 LB: > { %s28_s21 = sadd.s32 1, %s739_s19  ;;  %p664_p0 = scmp.ge.s32.totalorder %s743_s20, 1  ;;  %s743_s20 = sphi %s780_s20, %s16_s20   ;;  %s739_s19 = sphi %s778_s19, %s858_s19   ;;  %s735_s18 = sphi %s776_s18, %s857_s18  }
   0x3   : > { %p30_p1 = scmp.ge.s32.totalorder %s28_s21, 2  ;;  %p213_p2 = scmp.lt.s32.totalorder %s743_s20, 3 }
   0x5   : > { %s860_s21 = smov (%p30_p1, %s28_s21), 0  ;;  %p214_p3 = pnand %p664_p0, %p213_p2 }
   0x6   : > { %v332_v0 = vld [vmem:[%s854_s3] sm:$0xff] (!%p214_p3)  ;;  %v745_v2 = vmov (!%p214_p3), 0   ;;  %v333_v3 = vld [vmem:[%s854_s3 + $0x8] sm:$0xff] (!%p214_p3)  ;;  %v303_v5 = vld [vmem:[%s853_s2 + $0x18] sm:$0xff] (!%p214_p3)  ;;  %p259_p4 = scmp.lt.s32.totalorder (!%p214_p3), %s735_s18, 1  ;;  %vm390_vm0 = vcmask (!%p214_p3), 261120  }
   0x7   : > { %217 = sbr.rel (%p214_p3) target bundleno = 533 (0x215), region = 36  ;;  %v300_v1 = vld [vmem:[%s853_s2] sm:$0xff] (!%p214_p3)  ;;  %718 = vset.pattern.permute.xlu1 (!%p214_p3), %v745_v2  ;;  %717 = vset.pattern.permute.xlu0 (!%p214_p3), %v745_v2  ;;  %v301_v4 = vld [vmem:[%s853_s2 + $0x8] sm:$0xff] (!%p214_p3)  ;;  %v302_v6 = vld [vmem:[%s853_s2 + $0x10] sm:$0xff] (!%p214_p3)  ;;  %vm482_vm1 = vcmask (!%p214_p3), 7168   ;;  %vm487_vm2 = vcmask (!%p214_p3), 15360  }
   0x8   : > { %338 = vperm.xlu1 (!%p214_p3), %718, %v332_v0   ;;  %306 = vperm.xlu0 (!%p214_p3), %717, %v300_v1   ;;  %v335_v7 = vld [vmem:[%s854_s3 + $0x18] sm:$0xff] (!%p214_p3)  ;;  %v334_v8 = vld [vmem:[%s854_s3 + $0x10] sm:$0xff] (!%p214_p3)  ;;  %v719_v57 = vld [vmem:[%s852_s1] sm:$0xff] (!%p214_p3)  }
   0x9   : > { %429 = vmatprep.mubr.bf16.mxu0 (!%p214_p3), %v745_v2  ;;  %439 = vmatprep.mubr.bf16.mxu1 (!%p214_p3), %v745_v2  ;;  %v720_v58 = vld [vmem:[%s852_s1 + $0x8] sm:$0xff] (!%p214_p3)  }
   0xc   : > { %343 = vperm.xlu1 (!%p214_p3), %718, %v333_v3   ;;  %311 = vperm.xlu0 (!%p214_p3), %717, %v301_v4  }
   0xe   : > { %s862_s18 = smov (!%p259_p4, %s735_s18), 1 }
   0xf   : > { %s822_s13 = sshll.u32 %s862_s18, 5 }
  0x10   : > { %321 = vperm.xlu1 %718, %v303_v5   ;;  %316 = vperm.xlu0 %717, %v302_v6   ;;  %s266_s16 = scalar_lea.vmem %s851_s0, %s822_s13  ;;  %s276_s26 = scalar_lea.vmem %s855_s4, %s822_s13 }
  0x11   : > { %v288_v9 = vld [vmem:[%s266_s16] sm:$0xff]  ;;  %v289_v12 = vld [vmem:[%s266_s16 + $0x8] sm:$0xff]  ;;  %v291_v19 = vld [vmem:[%s266_s16 + $0x18] sm:$0xff]  ;;  %s286_s29 = scalar_lea.vmem %s856_s5, %s822_s13 }
  0x12   : > { %v292_v10 = vunpack.c.l.bf16 %v288_v9  ;;  %v293_v11 = vunpack.c.h.bf16 %v288_v9  ;;  %v294_v15 = vunpack.c.l.bf16 %v289_v12  ;;  %v295_v16 = vunpack.c.h.bf16 %v289_v12  ;;  %v290_v22 = vld [vmem:[%s266_s16 + $0x10] sm:$0xff] }
  0x13   : > { %v298_v27 = vunpack.c.l.bf16 %v291_v19  ;;  %v299_v28 = vunpack.c.h.bf16 %v291_v19  ;;  %v296_v31 = vunpack.c.l.bf16 %v290_v22  ;;  %v297_v32 = vunpack.c.h.bf16 %v290_v22 }
  0x14   : > { %353 = vperm.xlu1 %718, %v335_v7   ;;  %348 = vperm.xlu0 %717, %v334_v8  }
  0x87   : > { %v339_v13 = vpop.permute.xlu1 %338  ;;  %v307_v14 = vpop.permute.xlu0 %306 }
  0x88   : > { %v324_v17 = vmul.f32 %v307_v14, %v292_v10  ;;  %v325_v18 = vmul.f32 %v307_v14, %v293_v11 }
  0x8a   : > { %v356_v25 = vadd.f32 %v339_v13, %v324_v17  ;;  %v357_v26 = vadd.f32 %v339_v13, %v325_v18 }
  0x8b   : > { %v344_v20 = vpop.permute.xlu1 %343  ;;  %v312_v21 = vpop.permute.xlu0 %311 }
  0x8c   : > { %v326_v23 = vmul.f32 %v312_v21, %v294_v15  ;;  %v327_v24 = vmul.f32 %v312_v21, %v295_v16  ;;  %v365_v35 = vmax.f32 %v357_v26, 0.0  ;;  %v364_v37 = vmax.f32 %v356_v25, 0.0 }
  0x8e   : > { %v358_v29 = vadd.f32 %v344_v20, %v326_v23  ;;  %v359_v30 = vadd.f32 %v344_v20, %v327_v24 }
  0x8f   : > { %v322_v33 = vpop.permute.xlu1 %321  ;;  %v317_v34 = vpop.permute.xlu0 %316 }
  0x90   : > { %v367_v36 = vmax.f32 %v359_v30, 0.0  ;;  %v366_v38 = vmax.f32 %v358_v29, 0.0  ;;  %v330_v39 = vmul.f32 %v322_v33, %v298_v27  ;;  %v331_v40 = vmul.f32 %v322_v33, %v299_v28 }
  0x91   : > { %v328_v41 = vmul.f32 %v317_v34, %v296_v31  ;;  %v329_v42 = vmul.f32 %v317_v34, %v297_v32 }
  0x92   : > { %v373_v45 = vpack.c.bf16 %v367_v36, %v365_v35  ;;  %v372_v46 = vpack.c.bf16 %v366_v38, %v364_v37 }
  0x93   : > { %v354_v43 = vpop.permute.xlu1 %353  ;;  %v349_v44 = vpop.permute.xlu0 %348 }
  0x94   : > { %v362_v47 = vadd.f32 %v354_v43, %v330_v39  ;;  %v363_v48 = vadd.f32 %v354_v43, %v331_v40  ;;  %v360_v49 = vadd.f32 %v349_v44, %v328_v41  ;;  %v361_v50 = vadd.f32 %v349_v44, %v329_v42  ;;  %397 = vmatprep.subr.bf16.mxu0 %v373_v45 }
  0x95   : > { %688 = vmatprep.subr.bf16.mxu1 %v373_v45  ;;  %398 = vmatpush1.bf16.msra.mxu0 %v372_v46 }
  0x96   : > { %v370_v51 = vmax.f32 %v362_v47, 0.0  ;;  %v371_v52 = vmax.f32 %v363_v48, 0.0  ;;  %v368_v53 = vmax.f32 %v360_v49, 0.0  ;;  %v369_v54 = vmax.f32 %v361_v50, 0.0  ;;  %690 = vmatpush1.bf16.msra.mxu1 %v372_v46 }
  0x98   : > { %v375_v55 = vpack.c.bf16 %v371_v52, %v369_v54  ;;  %v374_v56 = vpack.c.bf16 %v370_v51, %v368_v53 }
  0x9a   : > { %399 = vmatprep.subr.bf16.mxu0 %v375_v55  ;;  %689 = vmatprep.subr.bf16.mxu1 %v375_v55 }
  0x9b   : > { %400 = vmatpush1.bf16.msra.mxu0 %v374_v56  ;;  %691 = vmatpush1.bf16.msra.mxu1 %v374_v56 }
  0x9e   : > { %673 = vmatmul.mubr.msk.bf16.vlgmr.msra.gmra.mrb[0].mxu0 %vm390_vm0, %v719_v57  ;;  %674 = vmatmul.mubr.msk.bf16.vlgmr.msra.gmra.mrb[0].mxu1 %vm390_vm0, %v720_v58 }
 0x171   : > { %v431_v59 = vpop.f32.mrb[0].mxu0  ;;  %v441_v60 = vpop.f32.mrb[0].mxu1 }
 0x172   : > { %v433_v61 = vpop.f32.mrb[1].mxu0  ;;  %v443_v62 = vpop.f32.mrb[1].mxu1  ;;  %v462_v63 = vmul.f32 %v431_v59, %v431_v59  ;;  %v466_v0 = vmul.f32 %v441_v60, %v441_v60 }
 0x173   : > { %v684_v1 = vpack.c.bf16 %v433_v61, %v431_v59  ;;  %v435_v2 = vpop.f32.mrb[2].mxu0  ;;  %v686_v3 = vpack.c.bf16 %v443_v62, %v441_v60  ;;  %v445_v4 = vpop.f32.mrb[2].mxu1  ;;  %v450_v5 = vadd.f32 %v433_v61, %v431_v59  ;;  %v456_v6 = vadd.f32 %v443_v62, %v441_v60 }
 0x174   : > { %v437_v7 = vpop.f32.mrb[3].mxu0  ;;  %v447_v8 = vpop.f32.mrb[3].mxu1  ;;  %v463_v9 = vmul.f32 %v433_v61, %v433_v61  ;;  %v467_v10 = vmul.f32 %v443_v62, %v443_v62  ;;  %v464_v11 = vmul.f32 %v435_v2, %v435_v2  ;;  %v468_v12 = vmul.f32 %v445_v4, %v445_v4 }
 0x175   : > { %516 = vst [vmem:[%s276_s26] sm:$0xff] %v684_v1  ;;  %518 = vst [vmem:[%s276_s26 + $0x10] sm:$0xff] %v686_v3  ;;  %v465_v13 = vmul.f32 %v437_v7, %v437_v7  ;;  %v685_v14 = vpack.c.bf16 %v437_v7, %v435_v2  ;;  %v469_v15 = vmul.f32 %v447_v8, %v447_v8  ;;  %451 = vadd.xlane.f32.xlu0 %v450_v5 }
 0x176   : > { %v687_v16 = vpack.c.bf16 %v447_v8, %v445_v4  ;;  %v453_v17 = vadd.f32 %v437_v7, %v435_v2  ;;  %v470_v18 = vadd.f32 %v463_v9, %v462_v63  ;;  %v459_v19 = vadd.f32 %v447_v8, %v445_v4 }
 0x177   : > { %v476_v20 = vadd.f32 %v467_v10, %v466_v0  ;;  %517 = vst [vmem:[%s276_s26 + $0x8] sm:$0xff] %v685_v14  ;;  %v473_v21 = vadd.f32 %v465_v13, %v464_v11  ;;  %v479_v22 = vadd.f32 %v469_v15, %v468_v12 }
 0x178   : > { %519 = vst [vmem:[%s276_s26 + $0x18] sm:$0xff] %v687_v16  ;;  %454 = vadd.xlane.f32.xlu1 %v453_v17 }
 0x179   : > { %457 = vadd.xlane.f32.xlu0 %v456_v6 }
 0x17c   : > { %471 = vadd.xlane.f32.xlu1 %v470_v18 }
 0x17d   : > { %460 = vadd.xlane.f32.xlu0 %v459_v19 }
 0x180   : > { %477 = vadd.xlane.f32.xlu1 %v476_v20 }
 0x181   : > { %474 = vadd.xlane.f32.xlu0 %v473_v21 }
 0x185   : > { %480 = vadd.xlane.f32.xlu0 %v479_v22 }
 0x202   : > { %v452_v23 = vpop.xlane.xlu0 %451 }
 0x205   : > { %v455_v24 = vpop.xlane.xlu1 %454 }
 0x206   : > { %v458_v25 = vpop.xlane.xlu0 %457 }
 0x209   : > { %v472_v26 = vpop.xlane.xlu1 %471 }
 0x20a   : > { %v483_v27 = vsel %vm482_vm1, %v452_v23, %v472_v26  ;;  %v461_v28 = vpop.xlane.xlu0 %460 }
 0x20b   : > { %488 = vst.msk [vmem:[%s286_s29] sm:$0xff] %vm487_vm2, %v483_v27 }
 0x20d   : > { %v478_v29 = vpop.xlane.xlu1 %477 }
 0x20e   : > { %v485_v30 = vsel %vm482_vm1, %v458_v25, %v478_v29  ;;  %v475_v31 = vpop.xlane.xlu0 %474 }
 0x20f   : > { %490 = vst.msk [vmem:[%s286_s29 + $0x10] sm:$0xff] %vm487_vm2, %v485_v30  ;;  %v484_v32 = vsel %vm482_vm1, %v455_v24, %v475_v31 }
 0x210   : > { %489 = vst.msk [vmem:[%s286_s29 + $0x8] sm:$0xff] %vm487_vm2, %v484_v32 }
 0x212   : > { %v481_v33 = vpop.xlane.xlu0 %480 }
 0x213   : > { %v486_v34 = vsel %vm482_vm1, %v461_v28, %v481_v33 }
 0x214   : > { %491 = vst.msk [vmem:[%s286_s29 + $0x18] sm:$0xff] %vm487_vm2, %v486_v34 }
 0x215 PF: > { %s16_s20 = sadd.s32 1, %s743_s20   ;;  %s857_s18 = smov %s739_s19 }
 0x216   : > { %p13_p5 = scmp.ge.s32.totalorder %s16_s20, 4   ;;  %s858_s19 = smov %s860_s21 }
 0x218   :  { %15 = sbr.rel (!%p13_p5) target bundleno = 2 (0x2), region = 78 }

</bundles_post_ra>
